<compile_context>
chip_gen: v7x
topology: tpu7x:2x2x1
jax: 0.10.0
libtpu: 0.0.40
codegen_flags: <defaults>
</compile_context>

<pallas_src>
import functools

import jax
import jax.numpy as jnp
from jax.experimental import pallas as pl
from jax.experimental.pallas import tpu as pltpu


def coord_att_kernel(x_ref, w1_ref, s1_ref, t1_ref,
                     wh_ref, bh_ref, ww_ref, bw_ref, o_ref,
                     *, H, W, block_n):
    """One grid step: `block_n` batch elements, each a lane-dense (C, H*W) slab."""
    inv_w = 1.0 / W
    inv_h = 1.0 / H

    # Small parameter tiles (VMEM-resident, constant block index -> fetched once).
    w1 = w1_ref[...]          # (mip, C)
    s1 = s1_ref[...]          # (mip, 1)   BN scale (eval mode, folded)
    t1 = t1_ref[...]          # (mip, 1)   BN shift + conv1 bias (folded)
    wh = wh_ref[...]          # (oup, mip)
    bh = bh_ref[...]          # (oup, 1)
    ww = ww_ref[...]          # (oup, mip)
    bw = bw_ref[...]          # (oup, 1)

    def h_swish(v):
        return v * jnp.clip(v + 3.0, 0.0, 6.0) * (1.0 / 6.0)

    for b in range(block_n):                       # static unroll over batched block
        x = x_ref[b]                               # (C, H*W) lane-dense slab

        # ---- adaptive average pools, computed on the flat layout (exact) ----
        strips = [x[:, h * W:(h + 1) * W] for h in range(H)]          # H x (C, W)
        # pool over W (contiguous lane segments) -> (C, H)
        x_h = jnp.concatenate(
            [jnp.sum(s, axis=1, keepdims=True) for s in strips], axis=1) * inv_w
        # pool over H (elementwise sum of the H strips) -> (C, W)
        acc = strips[0]
        for s in strips[1:]:
            acc = acc + s
        x_w = acc * inv_h

        # ---- conv1 (1x1) + BN(eval) + h_swish on each branch (no concat/split) ----
        z_h = h_swish(jnp.dot(w1, x_h, preferred_element_type=jnp.float32) * s1 + t1)  # (mip, H)
        z_w = h_swish(jnp.dot(w1, x_w, preferred_element_type=jnp.float32) * s1 + t1)  # (mip, W)

        # ---- conv_h / conv_w (1x1) + sigmoid ----
        a_h = jax.nn.sigmoid(jnp.dot(wh, z_h, preferred_element_type=jnp.float32) + bh)  # (oup, H)
        a_w = jax.nn.sigmoid(jnp.dot(ww, z_w, preferred_element_type=jnp.float32) + bw)  # (oup, W)

        # ---- build the (C, H*W) attention slab, then ONE lane-dense store ----
        attn = jnp.concatenate([a_h[:, h:h + 1] * a_w for h in range(H)], axis=1)  # (C, H*W)
        o_ref[b] = (x * attn).astype(o_ref.dtype)


def _pick_block_n(n, per_batch_bytes, target_bytes=1 << 20):
    """Largest divisor of n with block <= target bytes and (if n>=2) >=2 grid steps."""
    best = 1
    for nb in range(1, n + 1):
        if n % nb:
            continue
        if nb * per_batch_bytes > target_bytes:
            continue
        if n >= 2 and (n // nb) < 2:      # keep both v7x TensorCores busy
            continue
        best = nb
    return best


def coord_att(x, params, *, block_n=None):
    """x: (N, C, H, W) float32.  params: folded weights (see make_params)."""
    N, C, H, W = x.shape
    HW = H * W
    w1, s1, t1 = params["w1"], params["s1"], params["t1"]
    wh, bh = params["wh"], params["bh"]
    ww, bw = params["ww"], params["bw"]
    mip = w1.shape[0]
    oup = wh.shape[0]
    assert oup == C, "CoordAtt forward requires oup == inp for the final broadcast"

    if block_n is None:
        block_n = _pick_block_n(N, C * HW * x.dtype.itemsize)
    assert N % block_n == 0
    grid = (N // block_n,)

    # Lane-dense spatial layout: last dim = H*W (>=128), reshaped in the wrapper.
    x_flat = x.reshape(N, C, HW)

    full = lambda shape: pl.BlockSpec(shape, lambda n: (0,) * len(shape))

    block_bytes = block_n * C * HW * x.dtype.itemsize
    # Explicit scoped-VMEM budget (double-buffered in+out blocks + headroom),
    # capped at 64 MiB so the same plan is valid on v7x's smaller VMEM.
    vmem_limit = int(min(64 << 20, max(16 << 20, 6 * block_bytes)))

    kernel = functools.partial(coord_att_kernel, H=H, W=W, block_n=block_n)

    out_flat = pl.pallas_call(
        kernel,
        out_shape=jax.ShapeDtypeStruct((N, C, HW), x.dtype),
        grid_spec=pltpu.PrefetchScalarGridSpec(
            num_scalar_prefetch=0,
            grid=grid,
            in_specs=[
                pl.BlockSpec((block_n, C, HW), lambda n: (n, 0, 0)),
                full((mip, C)), full((mip, 1)), full((mip, 1)),
                full((oup, mip)), full((oup, 1)),
                full((oup, mip)), full((oup, 1)),
            ],
            out_specs=pl.BlockSpec((block_n, C, HW), lambda n: (n, 0, 0)),
        ),
        compiler_params=pltpu.CompilerParams(
            dimension_semantics=("parallel",),
            vmem_limit_bytes=vmem_limit),
    )(x_flat, w1, s1, t1, wh, bh, ww, bw)

    return out_flat.reshape(N, C, H, W)


def make_params(key, inp, oup, reduction=32):
    """Deterministic synthetic parameters matching CoordAtt.__init__ shapes.

    BatchNorm is applied in eval mode with synthetic running stats; it is
    folded (together with conv1's bias) into a per-channel scale/shift.
    """
    mip = max(8, inp // reduction)
    ks = jax.random.split(key, 8)
    w1 = jax.random.normal(ks[0], (mip, inp), jnp.float32) * 0.1   # conv1 1x1 weight
    b1 = jax.random.normal(ks[1], (mip,), jnp.float32) * 0.1       # conv1 bias
    gamma = 1.0 + 0.1 * jax.random.normal(ks[2], (mip,), jnp.float32)
    beta = 0.1 * jax.random.normal(ks[3], (mip,), jnp.float32)
    run_mean = 0.1 * jax.random.normal(ks[4], (mip,), jnp.float32)
    run_var = jnp.abs(jax.random.normal(ks[5], (mip,), jnp.float32)) + 0.5
    eps = 1e-5
    s1 = gamma / jnp.sqrt(run_var + eps)            # BN scale
    t1 = (b1 - run_mean) * s1 + beta                # BN shift with conv1 bias folded
    wh = jax.random.normal(ks[6], (oup, mip), jnp.float32) * 0.1   # conv_h weight
    bh = jnp.zeros((oup,), jnp.float32)
    ww = jax.random.normal(ks[7], (oup, mip), jnp.float32) * 0.1   # conv_w weight
    bw = jnp.zeros((oup,), jnp.float32)
    return {
        "w1": w1, "s1": s1[:, None], "t1": t1[:, None],
        "wh": wh, "bh": bh[:, None],
        "ww": ww, "bw": bw[:, None],
    }


def coord_att_ref(x, params):
    """Pure-JAX reference (mirrors the PyTorch forward, NCHW)."""
    N, C, H, W = x.shape
    x_h = jnp.mean(x, axis=3)                       # (N, C, H)
    x_w = jnp.mean(x, axis=2)                       # (N, C, W)
    y = jnp.concatenate([x_h, x_w], axis=2)         # (N, C, H+W)
    z = jnp.einsum("mc,ncl->nml", params["w1"], y)
    z = z * params["s1"][None] + params["t1"][None]
    z = z * jnp.clip(z + 3.0, 0.0, 6.0) / 6.0
    yh, yw = z[..., :H], z[..., H:]
    a_h = jax.nn.sigmoid(jnp.einsum("om,nml->nol", params["wh"], yh) + params["bh"][None])
    a_w = jax.nn.sigmoid(jnp.einsum("om,nml->nol", params["ww"], yw) + params["bw"][None])
    return x * a_h[:, :, :, None] * a_w[:, :, None, :]


if __name__ == "__main__":
    key = jax.random.PRNGKey(0)
    k_x, k_p = jax.random.split(key)

    N, C, H, W = 2, 4, 16, 16          # inp == oup == C (required for the final broadcast)
    x = jax.random.normal(k_x, (N, C, H, W), jnp.float32)
    params = make_params(k_p, inp=C, oup=C, reduction=32)

    out = coord_att(x, params)
    out = jax.block_until_ready(out)

    ref = coord_att_ref(x, params)
    assert out.shape == (N, C, H, W)
    # 1e-4 tolerance absorbs MXU default-precision / reduction-order differences.
    assert jnp.allclose(out, ref, atol=1e-4, rtol=1e-4)
    print("KERNEL_OK")
</pallas_src>

<mosaic_0001>
module attributes {stable_mosaic.version = 11 : i64} {
  func.func @coord_att_kernel(%arg0: i32, %arg1: memref<1x4x256xf32, #tpu.memory_space<vmem>>, %arg2: memref<8x4xf32, #tpu.memory_space<vmem>>, %arg3: memref<8x1xf32, #tpu.memory_space<vmem>>, %arg4: memref<8x1xf32, #tpu.memory_space<vmem>>, %arg5: memref<4x8xf32, #tpu.memory_space<vmem>>, %arg6: memref<4x1xf32, #tpu.memory_space<vmem>>, %arg7: memref<4x8xf32, #tpu.memory_space<vmem>>, %arg8: memref<4x1xf32, #tpu.memory_space<vmem>>, %arg9: memref<1x4x256xf32, #tpu.memory_space<vmem>>) attributes {dimension_semantics = [#tpu.dimension_semantics<parallel>], iteration_bounds = array<i64: 2>, scalar_prefetch = 0 : i64, scratch_operands = 0 : i64, tpu.core_type = #tpu.core_type<tc>, window_params = [{transform_indices = @transform_0, window_bounds = array<i64: 1, 4, 256>}, {pipeline_mode = #tpu.pipeline_mode<synchronous>, transform_indices = @transform_1, window_bounds = array<i64: 8, 4>}, {pipeline_mode = #tpu.pipeline_mode<synchronous>, transform_indices = @transform_2, window_bounds = array<i64: 8, 1>}, {pipeline_mode = #tpu.pipeline_mode<synchronous>, transform_indices = @transform_3, window_bounds = array<i64: 8, 1>}, {pipeline_mode = #tpu.pipeline_mode<synchronous>, transform_indices = @transform_4, window_bounds = array<i64: 4, 8>}, {pipeline_mode = #tpu.pipeline_mode<synchronous>, transform_indices = @transform_5, window_bounds = array<i64: 4, 1>}, {pipeline_mode = #tpu.pipeline_mode<synchronous>, transform_indices = @transform_6, window_bounds = array<i64: 4, 8>}, {pipeline_mode = #tpu.pipeline_mode<synchronous>, transform_indices = @transform_7, window_bounds = array<i64: 4, 1>}, {transform_indices = @transform_8, window_bounds = array<i64: 1, 4, 256>}]} {
    %c0 = arith.constant 0 : index
    %c0_0 = arith.constant 0 : index
    %0 = vector.load %arg2[%c0, %c0_0] : memref<8x4xf32, #tpu.memory_space<vmem>>, vector<8x4xf32>
    %c0_1 = arith.constant 0 : index
    %c0_2 = arith.constant 0 : index
    %1 = vector.load %arg3[%c0_1, %c0_2] : memref<8x1xf32, #tpu.memory_space<vmem>>, vector<8x1xf32>
    %c0_3 = arith.constant 0 : index
    %c0_4 = arith.constant 0 : index
    %2 = vector.load %arg4[%c0_3, %c0_4] : memref<8x1xf32, #tpu.memory_space<vmem>>, vector<8x1xf32>
    %c0_5 = arith.constant 0 : index
    %c0_6 = arith.constant 0 : index
    %3 = vector.load %arg5[%c0_5, %c0_6] : memref<4x8xf32, #tpu.memory_space<vmem>>, vector<4x8xf32>
    %c0_7 = arith.constant 0 : index
    %c0_8 = arith.constant 0 : index
    %4 = vector.load %arg6[%c0_7, %c0_8] : memref<4x1xf32, #tpu.memory_space<vmem>>, vector<4x1xf32>
    %c0_9 = arith.constant 0 : index
    %c0_10 = arith.constant 0 : index
    %5 = vector.load %arg7[%c0_9, %c0_10] : memref<4x8xf32, #tpu.memory_space<vmem>>, vector<4x8xf32>
    %c0_11 = arith.constant 0 : index
    %c0_12 = arith.constant 0 : index
    %6 = vector.load %arg8[%c0_11, %c0_12] : memref<4x1xf32, #tpu.memory_space<vmem>>, vector<4x1xf32>
    %c0_13 = arith.constant 0 : index
    %c0_14 = arith.constant 0 : index
    %c0_15 = arith.constant 0 : index
    %7 = vector.load %arg1[%c0_13, %c0_14, %c0_15] : memref<1x4x256xf32, #tpu.memory_space<vmem>>, vector<1x4x256xf32>
    %8 = vector.shape_cast %7 : vector<1x4x256xf32> to vector<4x256xf32>
    %9 = vector.extract_strided_slice %8 {offsets = [0, 0], sizes = [4, 16], strides = [1, 1]} : vector<4x256xf32> to vector<4x16xf32>
    %10 = vector.extract_strided_slice %8 {offsets = [0, 16], sizes = [4, 16], strides = [1, 1]} : vector<4x256xf32> to vector<4x16xf32>
    %11 = vector.extract_strided_slice %8 {offsets = [0, 32], sizes = [4, 16], strides = [1, 1]} : vector<4x256xf32> to vector<4x16xf32>
    %12 = vector.extract_strided_slice %8 {offsets = [0, 48], sizes = [4, 16], strides = [1, 1]} : vector<4x256xf32> to vector<4x16xf32>
    %13 = vector.extract_strided_slice %8 {offsets = [0, 64], sizes = [4, 16], strides = [1, 1]} : vector<4x256xf32> to vector<4x16xf32>
    %14 = vector.extract_strided_slice %8 {offsets = [0, 80], sizes = [4, 16], strides = [1, 1]} : vector<4x256xf32> to vector<4x16xf32>
    %15 = vector.extract_strided_slice %8 {offsets = [0, 96], sizes = [4, 16], strides = [1, 1]} : vector<4x256xf32> to vector<4x16xf32>
    %16 = vector.extract_strided_slice %8 {offsets = [0, 112], sizes = [4, 16], strides = [1, 1]} : vector<4x256xf32> to vector<4x16xf32>
    %17 = vector.extract_strided_slice %8 {offsets = [0, 128], sizes = [4, 16], strides = [1, 1]} : vector<4x256xf32> to vector<4x16xf32>
    %18 = vector.extract_strided_slice %8 {offsets = [0, 144], sizes = [4, 16], strides = [1, 1]} : vector<4x256xf32> to vector<4x16xf32>
    %19 = vector.extract_strided_slice %8 {offsets = [0, 160], sizes = [4, 16], strides = [1, 1]} : vector<4x256xf32> to vector<4x16xf32>
    %20 = vector.extract_strided_slice %8 {offsets = [0, 176], sizes = [4, 16], strides = [1, 1]} : vector<4x256xf32> to vector<4x16xf32>
    %21 = vector.extract_strided_slice %8 {offsets = [0, 192], sizes = [4, 16], strides = [1, 1]} : vector<4x256xf32> to vector<4x16xf32>
    %22 = vector.extract_strided_slice %8 {offsets = [0, 208], sizes = [4, 16], strides = [1, 1]} : vector<4x256xf32> to vector<4x16xf32>
    %23 = vector.extract_strided_slice %8 {offsets = [0, 224], sizes = [4, 16], strides = [1, 1]} : vector<4x256xf32> to vector<4x16xf32>
    %24 = vector.extract_strided_slice %8 {offsets = [0, 240], sizes = [4, 16], strides = [1, 1]} : vector<4x256xf32> to vector<4x16xf32>
    %cst = arith.constant dense<0.000000e+00> : vector<4xf32>
    %25 = vector.multi_reduction <add>, %9, %cst [1] : vector<4x16xf32> to vector<4xf32>
    %26 = vector.shape_cast %25 : vector<4xf32> to vector<4x1xf32>
    %cst_16 = arith.constant dense<0.000000e+00> : vector<4xf32>
    %27 = vector.multi_reduction <add>, %10, %cst_16 [1] : vector<4x16xf32> to vector<4xf32>
    %28 = vector.shape_cast %27 : vector<4xf32> to vector<4x1xf32>
    %cst_17 = arith.constant dense<0.000000e+00> : vector<4xf32>
    %29 = vector.multi_reduction <add>, %11, %cst_17 [1] : vector<4x16xf32> to vector<4xf32>
    %30 = vector.shape_cast %29 : vector<4xf32> to vector<4x1xf32>
    %cst_18 = arith.constant dense<0.000000e+00> : vector<4xf32>
    %31 = vector.multi_reduction <add>, %12, %cst_18 [1] : vector<4x16xf32> to vector<4xf32>
    %32 = vector.shape_cast %31 : vector<4xf32> to vector<4x1xf32>
    %cst_19 = arith.constant dense<0.000000e+00> : vector<4xf32>
    %33 = vector.multi_reduction <add>, %13, %cst_19 [1] : vector<4x16xf32> to vector<4xf32>
    %34 = vector.shape_cast %33 : vector<4xf32> to vector<4x1xf32>
    %cst_20 = arith.constant dense<0.000000e+00> : vector<4xf32>
    %35 = vector.multi_reduction <add>, %14, %cst_20 [1] : vector<4x16xf32> to vector<4xf32>
    %36 = vector.shape_cast %35 : vector<4xf32> to vector<4x1xf32>
    %cst_21 = arith.constant dense<0.000000e+00> : vector<4xf32>
    %37 = vector.multi_reduction <add>, %15, %cst_21 [1] : vector<4x16xf32> to vector<4xf32>
    %38 = vector.shape_cast %37 : vector<4xf32> to vector<4x1xf32>
    %cst_22 = arith.constant dense<0.000000e+00> : vector<4xf32>
    %39 = vector.multi_reduction <add>, %16, %cst_22 [1] : vector<4x16xf32> to vector<4xf32>
    %40 = vector.shape_cast %39 : vector<4xf32> to vector<4x1xf32>
    %cst_23 = arith.constant dense<0.000000e+00> : vector<4xf32>
    %41 = vector.multi_reduction <add>, %17, %cst_23 [1] : vector<4x16xf32> to vector<4xf32>
    %42 = vector.shape_cast %41 : vector<4xf32> to vector<4x1xf32>
    %cst_24 = arith.constant dense<0.000000e+00> : vector<4xf32>
    %43 = vector.multi_reduction <add>, %18, %cst_24 [1] : vector<4x16xf32> to vector<4xf32>
    %44 = vector.shape_cast %43 : vector<4xf32> to vector<4x1xf32>
    %cst_25 = arith.constant dense<0.000000e+00> : vector<4xf32>
    %45 = vector.multi_reduction <add>, %19, %cst_25 [1] : vector<4x16xf32> to vector<4xf32>
    %46 = vector.shape_cast %45 : vector<4xf32> to vector<4x1xf32>
    %cst_26 = arith.constant dense<0.000000e+00> : vector<4xf32>
    %47 = vector.multi_reduction <add>, %20, %cst_26 [1] : vector<4x16xf32> to vector<4xf32>
    %48 = vector.shape_cast %47 : vector<4xf32> to vector<4x1xf32>
    %cst_27 = arith.constant dense<0.000000e+00> : vector<4xf32>
    %49 = vector.multi_reduction <add>, %21, %cst_27 [1] : vector<4x16xf32> to vector<4xf32>
    %50 = vector.shape_cast %49 : vector<4xf32> to vector<4x1xf32>
    %cst_28 = arith.constant dense<0.000000e+00> : vector<4xf32>
    %51 = vector.multi_reduction <add>, %22, %cst_28 [1] : vector<4x16xf32> to vector<4xf32>
    %52 = vector.shape_cast %51 : vector<4xf32> to vector<4x1xf32>
    %cst_29 = arith.constant dense<0.000000e+00> : vector<4xf32>
    %53 = vector.multi_reduction <add>, %23, %cst_29 [1] : vector<4x16xf32> to vector<4xf32>
    %54 = vector.shape_cast %53 : vector<4xf32> to vector<4x1xf32>
    %cst_30 = arith.constant dense<0.000000e+00> : vector<4xf32>
    %55 = vector.multi_reduction <add>, %24, %cst_30 [1] : vector<4x16xf32> to vector<4xf32>
    %56 = vector.shape_cast %55 : vector<4xf32> to vector<4x1xf32>
    %57 = tpu.concatenate %26, %28, %30, %32, %34, %36, %38, %40, %42, %44, %46, %48, %50, %52, %54, %56 in 1 : vector<4x1xf32>, vector<4x1xf32>, vector<4x1xf32>, vector<4x1xf32>, vector<4x1xf32>, vector<4x1xf32>, vector<4x1xf32>, vector<4x1xf32>, vector<4x1xf32>, vector<4x1xf32>, vector<4x1xf32>, vector<4x1xf32>, vector<4x1xf32>, vector<4x1xf32>, vector<4x1xf32>, vector<4x1xf32> -> vector<4x16xf32>
    %cst_31 = arith.constant 6.250000e-02 : f32
    %58 = vector.broadcast %cst_31 : f32 to vector<4x16xf32>
    %59 = arith.mulf %57, %58 : vector<4x16xf32>
    %60 = arith.addf %9, %10 : vector<4x16xf32>
    %61 = arith.addf %60, %11 : vector<4x16xf32>
    %62 = arith.addf %61, %12 : vector<4x16xf32>
    %63 = arith.addf %62, %13 : vector<4x16xf32>
    %64 = arith.addf %63, %14 : vector<4x16xf32>
    %65 = arith.addf %64, %15 : vector<4x16xf32>
    %66 = arith.addf %65, %16 : vector<4x16xf32>
    %67 = arith.addf %66, %17 : vector<4x16xf32>
    %68 = arith.addf %67, %18 : vector<4x16xf32>
    %69 = arith.addf %68, %19 : vector<4x16xf32>
    %70 = arith.addf %69, %20 : vector<4x16xf32>
    %71 = arith.addf %70, %21 : vector<4x16xf32>
    %72 = arith.addf %71, %22 : vector<4x16xf32>
    %73 = arith.addf %72, %23 : vector<4x16xf32>
    %74 = arith.addf %73, %24 : vector<4x16xf32>
    %cst_32 = arith.constant 6.250000e-02 : f32
    %75 = vector.broadcast %cst_32 : f32 to vector<4x16xf32>
    %76 = arith.mulf %74, %75 : vector<4x16xf32>
    %cst_33 = arith.constant dense<0.000000e+00> : vector<8x16xf32>
    %77 = tpu.matmul %0, %59, %cst_33 {dimension_numbers = #tpu.dot_dimension_numbers<[1], [0], [0], [1], [0, 0, 1, 1], [], []>} : vector<8x4xf32>, vector<4x16xf32>, vector<8x16xf32> -> vector<8x16xf32>
    %78 = vector.broadcast %1 : vector<8x1xf32> to vector<8x16xf32>
    %79 = arith.mulf %77, %78 : vector<8x16xf32>
    %80 = vector.broadcast %2 : vector<8x1xf32> to vector<8x16xf32>
    %81 = arith.addf %79, %80 : vector<8x16xf32>
    %cst_34 = arith.constant 3.000000e+00 : f32
    %82 = vector.broadcast %cst_34 : f32 to vector<8x16xf32>
    %83 = arith.addf %81, %82 : vector<8x16xf32>
    %cst_35 = arith.constant 0.000000e+00 : f32
    %cst_36 = arith.constant 6.000000e+00 : f32
    %84 = vector.broadcast %cst_35 : f32 to vector<8x16xf32>
    %85 = arith.maximumf %84, %83 : vector<8x16xf32>
    %86 = vector.broadcast %cst_36 : f32 to vector<8x16xf32>
    %87 = arith.minimumf %86, %85 : vector<8x16xf32>
    %88 = arith.mulf %81, %87 : vector<8x16xf32>
    %cst_37 = arith.constant 0.166666672 : f32
    %89 = vector.broadcast %cst_37 : f32 to vector<8x16xf32>
    %90 = arith.mulf %88, %89 : vector<8x16xf32>
    %cst_38 = arith.constant dense<0.000000e+00> : vector<8x16xf32>
    %91 = tpu.matmul %0, %76, %cst_38 {dimension_numbers = #tpu.dot_dimension_numbers<[1], [0], [0], [1], [0, 0, 1, 1], [], []>} : vector<8x4xf32>, vector<4x16xf32>, vector<8x16xf32> -> vector<8x16xf32>
    %92 = vector.broadcast %1 : vector<8x1xf32> to vector<8x16xf32>
    %93 = arith.mulf %91, %92 : vector<8x16xf32>
    %94 = vector.broadcast %2 : vector<8x1xf32> to vector<8x16xf32>
    %95 = arith.addf %93, %94 : vector<8x16xf32>
    %cst_39 = arith.constant 3.000000e+00 : f32
    %96 = vector.broadcast %cst_39 : f32 to vector<8x16xf32>
    %97 = arith.addf %95, %96 : vector<8x16xf32>
    %cst_40 = arith.constant 0.000000e+00 : f32
    %cst_41 = arith.constant 6.000000e+00 : f32
    %98 = vector.broadcast %cst_40 : f32 to vector<8x16xf32>
    %99 = arith.maximumf %98, %97 : vector<8x16xf32>
    %100 = vector.broadcast %cst_41 : f32 to vector<8x16xf32>
    %101 = arith.minimumf %100, %99 : vector<8x16xf32>
    %102 = arith.mulf %95, %101 : vector<8x16xf32>
    %cst_42 = arith.constant 0.166666672 : f32
    %103 = vector.broadcast %cst_42 : f32 to vector<8x16xf32>
    %104 = arith.mulf %102, %103 : vector<8x16xf32>
    %cst_43 = arith.constant dense<0.000000e+00> : vector<4x16xf32>
    %105 = tpu.matmul %3, %90, %cst_43 {dimension_numbers = #tpu.dot_dimension_numbers<[1], [0], [0], [1], [0, 0, 1, 1], [], []>} : vector<4x8xf32>, vector<8x16xf32>, vector<4x16xf32> -> vector<4x16xf32>
    %106 = vector.broadcast %4 : vector<4x1xf32> to vector<4x16xf32>
    %107 = arith.addf %105, %106 : vector<4x16xf32>
    %108 = arith.negf %107 : vector<4x16xf32>
    %109 = math.exp %108 : vector<4x16xf32>
    %cst_44 = arith.constant 1.000000e+00 : f32
    %110 = vector.broadcast %cst_44 : f32 to vector<4x16xf32>
    %111 = arith.addf %110, %109 : vector<4x16xf32>
    %112 = arith.divf %110, %111 : vector<4x16xf32>
    %cst_45 = arith.constant dense<0.000000e+00> : vector<4x16xf32>
    %113 = tpu.matmul %5, %104, %cst_45 {dimension_numbers = #tpu.dot_dimension_numbers<[1], [0], [0], [1], [0, 0, 1, 1], [], []>} : vector<4x8xf32>, vector<8x16xf32>, vector<4x16xf32> -> vector<4x16xf32>
    %114 = vector.broadcast %6 : vector<4x1xf32> to vector<4x16xf32>
    %115 = arith.addf %113, %114 : vector<4x16xf32>
    %116 = arith.negf %115 : vector<4x16xf32>
    %117 = math.exp %116 : vector<4x16xf32>
    %cst_46 = arith.constant 1.000000e+00 : f32
    %118 = vector.broadcast %cst_46 : f32 to vector<4x16xf32>
    %119 = arith.addf %118, %117 : vector<4x16xf32>
    %120 = arith.divf %118, %119 : vector<4x16xf32>
    %121 = vector.extract_strided_slice %112 {offsets = [0, 0], sizes = [4, 1], strides = [1, 1]} : vector<4x16xf32> to vector<4x1xf32>
    %122 = vector.broadcast %121 : vector<4x1xf32> to vector<4x16xf32>
    %123 = arith.mulf %122, %120 : vector<4x16xf32>
    %124 = vector.extract_strided_slice %112 {offsets = [0, 1], sizes = [4, 1], strides = [1, 1]} : vector<4x16xf32> to vector<4x1xf32>
    %125 = vector.broadcast %124 : vector<4x1xf32> to vector<4x16xf32>
    %126 = arith.mulf %125, %120 : vector<4x16xf32>
    %127 = vector.extract_strided_slice %112 {offsets = [0, 2], sizes = [4, 1], strides = [1, 1]} : vector<4x16xf32> to vector<4x1xf32>
    %128 = vector.broadcast %127 : vector<4x1xf32> to vector<4x16xf32>
    %129 = arith.mulf %128, %120 : vector<4x16xf32>
    %130 = vector.extract_strided_slice %112 {offsets = [0, 3], sizes = [4, 1], strides = [1, 1]} : vector<4x16xf32> to vector<4x1xf32>
    %131 = vector.broadcast %130 : vector<4x1xf32> to vector<4x16xf32>
    %132 = arith.mulf %131, %120 : vector<4x16xf32>
    %133 = vector.extract_strided_slice %112 {offsets = [0, 4], sizes = [4, 1], strides = [1, 1]} : vector<4x16xf32> to vector<4x1xf32>
    %134 = vector.broadcast %133 : vector<4x1xf32> to vector<4x16xf32>
    %135 = arith.mulf %134, %120 : vector<4x16xf32>
    %136 = vector.extract_strided_slice %112 {offsets = [0, 5], sizes = [4, 1], strides = [1, 1]} : vector<4x16xf32> to vector<4x1xf32>
    %137 = vector.broadcast %136 : vector<4x1xf32> to vector<4x16xf32>
    %138 = arith.mulf %137, %120 : vector<4x16xf32>
    %139 = vector.extract_strided_slice %112 {offsets = [0, 6], sizes = [4, 1], strides = [1, 1]} : vector<4x16xf32> to vector<4x1xf32>
    %140 = vector.broadcast %139 : vector<4x1xf32> to vector<4x16xf32>
    %141 = arith.mulf %140, %120 : vector<4x16xf32>
    %142 = vector.extract_strided_slice %112 {offsets = [0, 7], sizes = [4, 1], strides = [1, 1]} : vector<4x16xf32> to vector<4x1xf32>
    %143 = vector.broadcast %142 : vector<4x1xf32> to vector<4x16xf32>
    %144 = arith.mulf %143, %120 : vector<4x16xf32>
    %145 = vector.extract_strided_slice %112 {offsets = [0, 8], sizes = [4, 1], strides = [1, 1]} : vector<4x16xf32> to vector<4x1xf32>
    %146 = vector.broadcast %145 : vector<4x1xf32> to vector<4x16xf32>
    %147 = arith.mulf %146, %120 : vector<4x16xf32>
    %148 = vector.extract_strided_slice %112 {offsets = [0, 9], sizes = [4, 1], strides = [1, 1]} : vector<4x16xf32> to vector<4x1xf32>
    %149 = vector.broadcast %148 : vector<4x1xf32> to vector<4x16xf32>
    %150 = arith.mulf %149, %120 : vector<4x16xf32>
    %151 = vector.extract_strided_slice %112 {offsets = [0, 10], sizes = [4, 1], strides = [1, 1]} : vector<4x16xf32> to vector<4x1xf32>
    %152 = vector.broadcast %151 : vector<4x1xf32> to vector<4x16xf32>
    %153 = arith.mulf %152, %120 : vector<4x16xf32>
    %154 = vector.extract_strided_slice %112 {offsets = [0, 11], sizes = [4, 1], strides = [1, 1]} : vector<4x16xf32> to vector<4x1xf32>
    %155 = vector.broadcast %154 : vector<4x1xf32> to vector<4x16xf32>
    %156 = arith.mulf %155, %120 : vector<4x16xf32>
    %157 = vector.extract_strided_slice %112 {offsets = [0, 12], sizes = [4, 1], strides = [1, 1]} : vector<4x16xf32> to vector<4x1xf32>
    %158 = vector.broadcast %157 : vector<4x1xf32> to vector<4x16xf32>
    %159 = arith.mulf %158, %120 : vector<4x16xf32>
    %160 = vector.extract_strided_slice %112 {offsets = [0, 13], sizes = [4, 1], strides = [1, 1]} : vector<4x16xf32> to vector<4x1xf32>
    %161 = vector.broadcast %160 : vector<4x1xf32> to vector<4x16xf32>
    %162 = arith.mulf %161, %120 : vector<4x16xf32>
    %163 = vector.extract_strided_slice %112 {offsets = [0, 14], sizes = [4, 1], strides = [1, 1]} : vector<4x16xf32> to vector<4x1xf32>
    %164 = vector.broadcast %163 : vector<4x1xf32> to vector<4x16xf32>
    %165 = arith.mulf %164, %120 : vector<4x16xf32>
    %166 = vector.extract_strided_slice %112 {offsets = [0, 15], sizes = [4, 1], strides = [1, 1]} : vector<4x16xf32> to vector<4x1xf32>
    %167 = vector.broadcast %166 : vector<4x1xf32> to vector<4x16xf32>
    %168 = arith.mulf %167, %120 : vector<4x16xf32>
    %169 = tpu.concatenate %123, %126, %129, %132, %135, %138, %141, %144, %147, %150, %153, %156, %159, %162, %165, %168 in 1 : vector<4x16xf32>, vector<4x16xf32>, vector<4x16xf32>, vector<4x16xf32>, vector<4x16xf32>, vector<4x16xf32>, vector<4x16xf32>, vector<4x16xf32>, vector<4x16xf32>, vector<4x16xf32>, vector<4x16xf32>, vector<4x16xf32>, vector<4x16xf32>, vector<4x16xf32>, vector<4x16xf32>, vector<4x16xf32> -> vector<4x256xf32>
    %170 = arith.mulf %8, %169 : vector<4x256xf32>
    %c0_47 = arith.constant 0 : index
    %c0_48 = arith.constant 0 : index
    %c0_49 = arith.constant 0 : index
    %171 = vector.load %arg9[%c0_47, %c0_48, %c0_49] : memref<1x4x256xf32, #tpu.memory_space<vmem>>, vector<1x4x256xf32>
    %172 = vector.shape_cast %171 : vector<1x4x256xf32> to vector<4x256xf32>
    %173 = vector.shape_cast %170 : vector<4x256xf32> to vector<1x4x256xf32>
    tpu.vector_store %arg9[%c0_47, %c0_48, %c0_49], %173 {strides = array<i32>} : memref<1x4x256xf32, #tpu.memory_space<vmem>>, vector<1x4x256xf32>,
    return
  }
  func.func @transform_0(%arg0: i32) -> (i32, i32, i32) {
    %c0_i32 = arith.constant 0 : i32
    %c0_i32_0 = arith.constant 0 : i32
    %c0_i32_1 = arith.constant 0 : i32
    return %arg0, %c0_i32, %c0_i32_0 : i32, i32, i32
  }
  func.func @transform_1(%arg0: i32) -> (i32, i32) {
    %c0_i32 = arith.constant 0 : i32
    %c0_i32_0 = arith.constant 0 : i32
    %c0_i32_1 = arith.constant 0 : i32
    return %c0_i32, %c0_i32_0 : i32, i32
  }
  func.func @transform_2(%arg0: i32) -> (i32, i32) {
    %c0_i32 = arith.constant 0 : i32
    %c0_i32_0 = arith.constant 0 : i32
    %c0_i32_1 = arith.constant 0 : i32
    return %c0_i32, %c0_i32_0 : i32, i32
  }
  func.func @transform_3(%arg0: i32) -> (i32, i32) {
    %c0_i32 = arith.constant 0 : i32
    %c0_i32_0 = arith.constant 0 : i32
    %c0_i32_1 = arith.constant 0 : i32
    return %c0_i32, %c0_i32_0 : i32, i32
  }
  func.func @transform_4(%arg0: i32) -> (i32, i32) {
    %c0_i32 = arith.constant 0 : i32
    %c0_i32_0 = arith.constant 0 : i32
    %c0_i32_1 = arith.constant 0 : i32
    return %c0_i32, %c0_i32_0 : i32, i32
  }
  func.func @transform_5(%arg0: i32) -> (i32, i32) {
    %c0_i32 = arith.constant 0 : i32
    %c0_i32_0 = arith.constant 0 : i32
    %c0_i32_1 = arith.constant 0 : i32
    return %c0_i32, %c0_i32_0 : i32, i32
  }
  func.func @transform_6(%arg0: i32) -> (i32, i32) {
    %c0_i32 = arith.constant 0 : i32
    %c0_i32_0 = arith.constant 0 : i32
    %c0_i32_1 = arith.constant 0 : i32
    return %c0_i32, %c0_i32_0 : i32, i32
  }
  func.func @transform_7(%arg0: i32) -> (i32, i32) {
    %c0_i32 = arith.constant 0 : i32
    %c0_i32_0 = arith.constant 0 : i32
    %c0_i32_1 = arith.constant 0 : i32
    return %c0_i32, %c0_i32_0 : i32, i32
  }
  func.func @transform_8(%arg0: i32) -> (i32, i32, i32) {
    %c0_i32 = arith.constant 0 : i32
    %c0_i32_0 = arith.constant 0 : i32
    %c0_i32_1 = arith.constant 0 : i32
    return %arg0, %c0_i32, %c0_i32_0 : i32, i32, i32
  }
}

</mosaic_0001>

<bundles_post_ra>
// kernel: tpu_custom_call.1
= control target key start
LH: loop header
LB: loop body
LE: loop exit
PB: predicated region body
PF: predicated region fallthrough
CT: control target
= control target key end

     0   :  { %13 = vsyncpa [#allocation3], 0  ;;  %s1528_s0 = inlined_call_operand.vmem [shape: f32[2,4,256], index: 0, kind: input, shape index: {}]   ;;  %s1529_s1 = inlined_call_operand.vmem [shape: f32[8,4], index: 1, kind: input, shape index: {}]   ;;  %s1530_s2 = inlined_call_operand.vmem [shape: f32[8,1], index: 2, kind: input, shape index: {}]   ;;  %s1531_s3 = inlined_call_operand.vmem [shape: f32[8,1], index: 3, kind: input, shape index: {}]   ;;  %s1532_s4 = inlined_call_operand.vmem [shape: f32[4,8], index: 4, kind: input, shape index: {}]   ;;  %s1533_s5 = inlined_call_operand.vmem [shape: f32[4,1], index: 5, kind: input, shape index: {}]   ;;  %s1534_s6 = inlined_call_operand.vmem [shape: f32[4,8], index: 6, kind: input, shape index: {}]   ;;  %s1535_s7 = inlined_call_operand.vmem [shape: f32[4,1], index: 7, kind: input, shape index: {}]   ;;  %s1536_s8 = inlined_call_operand.hbm [shape: f32[2,4,256], index: 8, kind: output, shape index: {}]  }
   0x1   :  { %15 = vsyncpa [#allocation3 + $0x1], 0  ;;  %s1324_s27 = smov 0   ;;  %s1326_s28 = smov 0  }
   0x2   :  { %s1328_s29 = smov 0   ;;  %s1330_s30 = smov 0  }
   0x3 LB: > { %s1345_s9 = sadd.s32 4294967295, %s1251_s30   ;;  %s1049_s10 = sadd.s32 4294967294, %s1251_s30   ;;  %s1251_s30 = sphi %s1330_s30, %s1548_s30   ;;  %s1247_s29 = sphi %s1328_s29, %s1547_s29   ;;  %s1243_s28 = sphi %s1326_s28, %s1546_s28   ;;  %s1239_s27 = sphi %s1324_s27, %s1545_s27  }
   0x4   : > { %s1349_s11 = sadd.s32 1, %s1251_s30   ;;  %s201_s12 = sadd.s32 1, %s1247_s29 }
   0x5   : > { %s198_s13 = ssub.s32 %s1251_s30, %s1349_s11  ;;  %p211_p0 = scmp.ne.s32.totalorder %s1247_s29, %s1243_s28 }
   0x6   : > { %p199_p1 = scmp.eq.s32.totalorder %s198_s13, 0  ;;  %p212_p2 = scmp.eq.s32.totalorder %s1345_s9, 1 }
   0x7   : > { %p217_p3 = scmp.ne.s32.totalorder %s1243_s28, %s1239_s27  ;;  %p218_p4 = scmp.eq.s32.totalorder %s1049_s10, 1 }
   0x8   : > { %s1360_s14 = scalar_select %p199_p1, %s1247_s29, %s201_s12  }
   0x9   : > { %p1362_p5 = por %p212_p2, %p211_p0  ;;  %p1366_p6 = por %p218_p4, %p217_p3 }
   0xa   : > { %p1052_p7 = scmp.ge.s32.totalorder %s1251_s30, 1  ;;  %p265_p8 = scmp.lt.s32.totalorder %s1251_s30, 3 }
   0xc   : > { %p266_p9 = pnand %p1052_p7, %p265_p8 }
   0xd   : > { %p299_p10 = scmp.lt.s32.totalorder (!%p266_p9), %s1345_s9, 1  ;;  %s1537_s22 = smov (!%p266_p9), 112   ;;  %v1260_v2 = vmov (!%p266_p9), 0.0   ;;  %vm1261_vm0 = vmmov (!%p266_p9), 0   ;;  %v1262_v3 = vmov (!%p266_p9), 0   ;;  %vm312_vm1 = vcmask (!%p266_p9), 125952  }
   0xe   : > { %269 = sbr.rel (%p266_p9) target bundleno = 1107 (0x453), region = 52  ;;  %s1539_s23 = smov (!%p266_p9), 80   ;;  %1084 = vmatprep.subr.mxu1 (!%p266_p9), %v1260_v2  ;;  %1079 = vmatprep.subr.mxu0 (!%p266_p9), %v1260_v2  ;;  %vm472_vm2 = vcmask (!%p266_p9), 1043456   ;;  %v304_v58 = vld [vmem:[%s1529_s1] sm:$0xff] (!%p266_p9)  ;;  %vm412_vm3 = vcmask (!%p266_p9), 31744   ;;  %vm406_vm4 = vcmask (!%p266_p9), 7168  }
   0xf   : > { %s1255_s24 = smov (!%p266_p9), 96   ;;  %s1256_s25 = smov (!%p266_p9), 64   ;;  %1086 = vmatprep.mubr.msk.f32.mxu1 (!%p266_p9), %vm1261_vm0, %v1260_v2  ;;  %1081 = vmatprep.mubr.msk.f32.mxu0 (!%p266_p9), %vm1261_vm0, %v1260_v2  ;;  %v305_v59 = vld [vmem:[%s1530_s2] sm:$0xff] (!%p266_p9)  ;;  %vm408_vm5 = vcmask (!%p266_p9), 15360   ;;  %vm410_vm6 = vcmask (!%p266_p9), 23552   ;;  %vm414_vm7 = vcmask (!%p266_p9), 39936  }
  0x10   : > { %s1257_s26 = smov (!%p266_p9), 48   ;;  %s1258_s10 = smov (!%p266_p9), 32   ;;  %1163 = vset.pattern.permute.xlu1 (!%p266_p9), %v1262_v3  ;;  %1164 = vset.pattern.permute.xlu0 (!%p266_p9), %v1262_v3  ;;  %v306_v60 = vld [vmem:[%s1531_s3] sm:$0xff] (!%p266_p9)  ;;  %vm416_vm8 = vcmask (!%p266_p9), 48128   ;;  %vm418_vm9 = vcmask (!%p266_p9), 56320   ;;  %vm420_vm10 = vcmask (!%p266_p9), 64512  }
  0x11   : > { %s1259_s12 = smov (!%p266_p9), 16   ;;  %v308_v61 = vld [vmem:[%s1533_s5] sm:$0xf] (!%p266_p9)  ;;  %vm422_vm11 = vcmask (!%p266_p9), 72704   ;;  %vm424_vm12 = vcmask (!%p266_p9), 80896   ;;  %vm426_vm13 = vcmask (!%p266_p9), 89088  }
  0x12   : > { %v310_v62 = vld [vmem:[%s1535_s7] sm:$0xf] (!%p266_p9)  ;;  %vm428_vm14 = vcmask (!%p266_p9), 97280   ;;  %vm430_vm15 = vcmask (!%p266_p9), 105472   ;;  %s1543_s20 = smov (!%p266_p9), 80  }
  0x15   : > { %s300_s17 = scalar_select %p299_p10, %s1345_s9, 1 }
  0x17   : > { %s1069_s18 = sshll.u32 %s300_s17, 3 }
  0x18   : > { %s303_s21 = scalar_lea.vmem %s1528_s0, %s1069_s18 }
  0x19   : > { %v1377_v0 = vld [vmem:[%s303_s21] sm:$0xff]  ;;  %s1544_s21 = smov 112  }
  0x1a   : > { %317 = vrot.lane.b32.xlu0 %v1377_v0, %s1537_s22  ;;  %329 = vrot.lane.b32.xlu1 %v1377_v0, %s1539_s23  ;;  %v359_v1 = vcombine.high %v1377_v0, %v1377_v0  ;;  %v313_v4 = vsel %vm312_vm1, %v1377_v0, 0.0  ;;  %v444_v26 = vrot.slane %v1377_v0, 4 }
  0x1c   : > { %v361_v5 = vsel %vm312_vm1, %v359_v1, 0.0 }
  0x1e   : > { %323 = vrot.lane.b32.xlu0 %v1377_v0, %s1255_s24  ;;  %335 = vrot.lane.b32.xlu1 %v1377_v0, %s1256_s25 }
  0x22   : > { %341 = vrot.lane.b32.xlu0 %v1377_v0, %s1257_s26  ;;  %347 = vrot.lane.b32.xlu1 %v1377_v0, %s1258_s10 }
  0x26   : > { %353 = vrot.lane.b32.xlu0 %v1377_v0, %s1259_s12  ;;  %364 = vrot.lane.b32.xlu1 %v359_v1, %s1537_s22 }
  0x2a   : > { %370 = vrot.lane.b32.xlu0 %v359_v1, %s1255_s24  ;;  %376 = vrot.lane.b32.xlu1 %v359_v1, %s1539_s23 }
  0x2e   : > { %382 = vrot.lane.b32.xlu0 %v359_v1, %s1256_s25  ;;  %388 = vrot.lane.b32.xlu1 %v359_v1, %s1257_s26 }
  0x32   : > { %394 = vrot.lane.b32.xlu0 %v359_v1, %s1258_s10  ;;  %400 = vrot.lane.b32.xlu1 %v359_v1, %s1259_s12 }
  0x51   : > { %314 = vadd.xlane.f32.xlu0 %v313_v4 }
  0x56   : > { %362 = vadd.xlane.f32.xlu1 %v361_v5 }
  0x8c   : > { %v318_v6 = vpop.permute.xlu0 %317  ;;  %v330_v7 = vpop.permute.xlu1 %329 }
  0x8d   : > { %v320_v8 = vsel %vm312_vm1, %v318_v6, 0.0  ;;  %v437_v9 = vadd.f32 %v318_v6, %v1377_v0  ;;  %v332_v16 = vsel %vm312_vm1, %v330_v7, 0.0  ;;  %v447_v31 = vrot.slane %v318_v6, 4 }
  0x8e   : > { %321 = vadd.xlane.f32.xlu1 %v320_v8  ;;  %v453_v38 = vrot.slane %v330_v7, 4 }
  0x90   : > { %v324_v10 = vpop.permute.xlu0 %323  ;;  %v336_v11 = vpop.permute.xlu1 %335 }
  0x91   : > { %v438_v12 = vadd.f32 %v437_v9, %v324_v10  ;;  %v326_v13 = vsel %vm312_vm1, %v324_v10, 0.0  ;;  %v338_v14 = vsel %vm312_vm1, %v336_v11, 0.0  ;;  %v450_v34 = vrot.slane %v324_v10, 4 }
  0x92   : > { %327 = vadd.xlane.f32.xlu0 %v326_v13  ;;  %339 = vadd.xlane.f32.xlu1 %v338_v14  ;;  %v456_v42 = vrot.slane %v336_v11, 4 }
  0x93   : > { %v439_v15 = vadd.f32 %v438_v12, %v330_v7 }
  0x94   : > { %v342_v17 = vpop.permute.xlu0 %341  ;;  %v348_v18 = vpop.permute.xlu1 %347 }
  0x95   : > { %v440_v19 = vadd.f32 %v439_v15, %v336_v11  ;;  %v350_v20 = vsel %vm312_vm1, %v348_v18, 0.0  ;;  %v344_v22 = vsel %vm312_vm1, %v342_v17, 0.0  ;;  %v459_v46 = vrot.slane %v342_v17, 4 }
  0x96   : > { %333 = vadd.xlane.f32.xlu0 %v332_v16  ;;  %351 = vadd.xlane.f32.xlu1 %v350_v20  ;;  %v462_v49 = vrot.slane %v348_v18, 4 }
  0x97   : > { %v441_v21 = vadd.f32 %v440_v19, %v342_v17 }
  0x98   : > { %v354_v23 = vpop.permute.xlu0 %353  ;;  %v365_v24 = vpop.permute.xlu1 %364 }
  0x99   : > { %v442_v25 = vadd.f32 %v441_v21, %v348_v18  ;;  %v356_v28 = vsel %vm312_vm1, %v354_v23, 0.0  ;;  %v367_v36 = vsel %vm312_vm1, %v365_v24, 0.0  ;;  %v465_v53 = vrot.slane %v354_v23, 4 }
  0x9a   : > { %345 = vadd.xlane.f32.xlu0 %v344_v22 }
  0x9b   : > { %v443_v27 = vadd.f32 %v442_v25, %v354_v23 }
  0x9c   : > { %v371_v29 = vpop.permute.xlu0 %370  ;;  %v377_v30 = vpop.permute.xlu1 %376 }
  0x9d   : > { %v446_v32 = vadd.f32 %v444_v26, %v443_v27  ;;  %v373_v33 = vsel %vm312_vm1, %v371_v29, 0.0  ;;  %v379_v44 = vsel %vm312_vm1, %v377_v30, 0.0 }
  0x9e   : > { %357 = vadd.xlane.f32.xlu0 %v356_v28  ;;  %374 = vadd.xlane.f32.xlu1 %v373_v33 }
  0x9f   : > { %v449_v35 = vadd.f32 %v447_v31, %v446_v32 }
  0xa0   : > { %v383_v37 = vpop.permute.xlu0 %382  ;;  %v389_v41 = vpop.permute.xlu1 %388 }
  0xa1   : > { %v452_v39 = vadd.f32 %v450_v34, %v449_v35  ;;  %v385_v40 = vsel %vm312_vm1, %v383_v37, 0.0  ;;  %v391_v50 = vsel %vm312_vm1, %v389_v41, 0.0 }
  0xa2   : > { %368 = vadd.xlane.f32.xlu0 %v367_v36  ;;  %386 = vadd.xlane.f32.xlu1 %v385_v40 }
  0xa3   : > { %v455_v43 = vadd.f32 %v453_v38, %v452_v39 }
  0xa4   : > { %v395_v45 = vpop.permute.xlu0 %394  ;;  %v401_v52 = vpop.permute.xlu1 %400 }
  0xa5   : > { %v397_v47 = vsel %vm312_vm1, %v395_v45, 0.0  ;;  %v458_v48 = vadd.f32 %v456_v42, %v455_v43  ;;  %v403_v55 = vsel %vm312_vm1, %v401_v52, 0.0  ;;  %vm432_vm1 = vcmask 113664  }
  0xa6   : > { %380 = vadd.xlane.f32.xlu0 %v379_v44  ;;  %398 = vadd.xlane.f32.xlu1 %v397_v47  ;;  %v309_v44 = vld [vmem:[%s1534_s6] sm:$0xf] }
  0xa7   : > { %v461_v51 = vadd.f32 %v459_v46, %v458_v48 }
  0xa9   : > { %v464_v54 = vadd.f32 %v462_v49, %v461_v51 }
  0xaa   : > { %392 = vadd.xlane.f32.xlu0 %v391_v50 }
  0xab   : > { %v467_v56 = vadd.f32 %v465_v53, %v464_v54  ;;  %v307_v53 = vld [vmem:[%s1532_s4] sm:$0xf] }
  0xad   : > { %v468_v57 = vmul.f32 0.0625, %v467_v56  ;;  %v1263_v56 = vmov 6  }
  0xae   : > { %404 = vadd.xlane.f32.xlu0 %v403_v55 }
  0xaf   : > { %1085 = vmatpush3.msk.msra.mxu1 %vm472_vm2, %v468_v57 }
  0xb0   : > { %1087 = vmatmul.mubr.msk.f32.vlgmr.msra.gmra.mrb[0].mxu1 %vm412_vm3, %v304_v58  ;;  %1094 = vmatprep.subr.mxu1 %v1260_v2 }
  0xb1   : > { %1096 = vmatprep.mubr.msk.f32.mxu1 %vm1261_vm0, %v1260_v2 }
  0xb7   : > { %548 = vperm.xlu1 %1163, %v305_v59  }
  0xbb   : > { %645 = vperm.xlu1 %1163, %v308_v61  }
  0xbf   : > { %729 = vperm.xlu1 %1163, %v310_v62  }
  0xc4   : > { %554 = vperm.xlu0 %1164, %v306_v60  }
  0xc8   : > { %1170 = vset.pattern.permute.xlu0 %v1263_v56 }
  0xde   : > { %v315_v1 = vpop.xlane.xlu0 %314 }
  0xe3   : > { %v363_v63 = vpop.xlane.xlu1 %362 }
 0x11b   : > { %v322_v3 = vpop.xlane.xlu1 %321 }
 0x11c   : > { %v407_v5 = vsel %vm406_vm4, %v315_v1, %v322_v3  ;;  %vm434_vm4 = vcmask 121856   ;;  %v1264_v3 = vmov 9  }
 0x11f   : > { %v328_v4 = vpop.xlane.xlu0 %327  ;;  %v340_v6 = vpop.xlane.xlu1 %339 }
 0x120   : > { %v409_v7 = vsel %vm408_vm5, %v407_v5, %v328_v4  ;;  %v1265_v4 = vmov 1   ;;  %v1266_v5 = vmov 12   ;;  %vm954_vm5 = vcmask 523264  }
 0x123   : > { %v334_v8 = vpop.xlane.xlu0 %333  ;;  %v352_v13 = vpop.xlane.xlu1 %351 }
 0x124   : > { %v411_v9 = vsel %vm410_vm6, %v409_v7, %v334_v8  ;;  %v1268_v7 = vmov 15   ;;  %v1269_v8 = vmov 3   ;;  %vm956_vm6 = vcmask 654336  }
 0x125   : > { %v413_v10 = vsel %vm412_vm3, %v411_v9, %v340_v6  ;;  %v1267_v6 = vmov 2   ;;  %v1270_v9 = vmov 4  }
 0x127   : > { %v346_v11 = vpop.xlane.xlu0 %345 }
 0x128   : > { %v415_v12 = vsel %vm414_vm7, %v413_v10, %v346_v11  ;;  %v1271_v10 = vmov 5   ;;  %v1272_v11 = vmov 7   ;;  %vm958_vm7 = vcmask 785408  }
 0x129   : > { %v417_v14 = vsel %vm416_vm8, %v415_v12, %v352_v13  ;;  %v1273_v12 = vmov 8   ;;  %v1274_v13 = vmov 10   ;;  %vm960_vm8 = vcmask 916480  }
 0x12b   : > { %v358_v15 = vpop.xlane.xlu0 %357  ;;  %v375_v17 = vpop.xlane.xlu1 %374 }
 0x12c   : > { %v419_v16 = vsel %vm418_vm9, %v417_v14, %v358_v15  ;;  %v1275_v14 = vmov 11   ;;  %v1276_v15 = vmov 13  }
 0x12d   : > { %v421_v18 = vsel %vm420_vm10, %v419_v16, %v363_v63  ;;  %v1277_v16 = vmov 14  }
 0x12f   : > { %v369_v19 = vpop.xlane.xlu0 %368  ;;  %v387_v21 = vpop.xlane.xlu1 %386 }
 0x130   : > { %v423_v20 = vsel %vm422_vm11, %v421_v18, %v369_v19 }
 0x131   : > { %v425_v22 = vsel %vm424_vm12, %v423_v20, %v375_v17 }
 0x133   : > { %v381_v23 = vpop.xlane.xlu0 %380  ;;  %v399_v28 = vpop.xlane.xlu1 %398 }
 0x134   : > { %v427_v24 = vsel %vm426_vm13, %v425_v22, %v381_v23 }
 0x135   : > { %v429_v25 = vsel %vm428_vm14, %v427_v24, %v387_v21 }
 0x137   : > { %v393_v26 = vpop.xlane.xlu0 %392  ;;  %v549_v33 = vpop.permute.xlu1 %548 }
 0x138   : > { %v431_v27 = vsel %vm430_vm15, %v429_v25, %v393_v26 }
 0x139   : > { %v433_v29 = vsel %vm432_vm1, %v431_v27, %v399_v28 }
 0x13b   : > { %v405_v30 = vpop.xlane.xlu0 %404  ;;  %v646_v57 = vpop.permute.xlu1 %645 }
 0x13c   : > { %v435_v31 = vsel %vm434_vm4, %v433_v29, %v405_v30 }
 0x13d   : > { %v436_v32 = vmul.f32 0.0625, %v435_v31 }
 0x13f   : > { %1080 = vmatpush3.msk.msra.mxu0 %vm472_vm2, %v436_v32  ;;  %v730_v17 = vpop.permute.xlu1 %729  ;;  %vm950_vm2 = vcmask 261120  }
 0x140   : > { %1082 = vmatmul.mubr.msk.f32.vlgmr.msra.gmra.mrb[0].mxu0 %vm412_vm3, %v304_v58  ;;  %1089 = vmatprep.subr.mxu0 %v1260_v2  ;;  %vm952_vm3 = vcmask 392192  }
 0x141   : > { %1091 = vmatprep.mubr.msk.f32.mxu0 %vm1261_vm0, %v1260_v2  ;;  %vm948_vm0 = vcmask 130048  }
 0x143   : > { %v555_v35 = vpop.permute.xlu0 %554 }
 0x183   : > { %v632_v34 = vpop.f32.mrb[0].mxu1 }
 0x184   : > { %v636_v36 = vmul.f32 %v632_v34, %v549_v33  ;;  %v1088_v37 = vpop.f32.mrb[1].mxu1 }
 0x186   : > { %v637_v38 = vadd.f32 %v636_v36, %v555_v35 }
 0x188   : > { %v638_v39 = vadd.f32 3.0, %v637_v38 }
 0x18a   : > { %v639_v40 = vmax.f32 %v638_v39, 0.0 }
 0x18c   : > { %v640_v41 = vmin.f32 %v639_v40, 6.0 }
 0x18e   : > { %v641_v42 = vmul.f32 %v640_v41, %v637_v38 }
 0x190   : > { %v642_v43 = vmul.f32 0.16666667, %v641_v42 }
 0x192   : > { %1095 = vmatpush3.msra.mxu1 %v642_v43 }
 0x193   : > { %1097 = vmatmul.mubr.msk.f32.vlgmr.msra.gmra.mrb[2].mxu1 %vm420_vm10, %v309_v44 }
 0x213   : > { %v542_v45 = vpop.f32.mrb[0].mxu0 }
 0x214   : > { %v551_v2 = vmul.f32 %v549_v33, %v542_v45  ;;  %v1083_v46 = vpop.f32.mrb[1].mxu0 }
 0x216   : > { %v557_v47 = vadd.f32 %v555_v35, %v551_v2 }
 0x218   : > { %v558_v48 = vadd.f32 3.0, %v557_v47 }
 0x21a   : > { %v559_v49 = vmax.f32 %v558_v48, 0.0 }
 0x21c   : > { %v560_v50 = vmin.f32 %v559_v49, 6.0 }
 0x21e   : > { %v561_v51 = vmul.f32 %v560_v50, %v557_v47 }
 0x220   : > { %v562_v52 = vmul.f32 0.16666667, %v561_v51 }
 0x222   : > { %1090 = vmatpush3.msra.mxu0 %v562_v52 }
 0x223   : > { %1092 = vmatmul.mubr.msk.f32.vlgmr.msra.gmra.mrb[2].mxu0 %vm420_vm10, %v307_v53 }
 0x266   : > { %v801_v54 = vpop.f32.mrb[2].mxu1 }
 0x267   : > { %v1098_v55 = vpop.f32.mrb[3].mxu1  ;;  %v802_v18 = vadd.f32 %v801_v54, %v730_v17 }
 0x269   : > { %v1063_v19 = vmul.f32 -1.442695, %v802_v18 }
 0x2f6   : > { %v717_v58 = vpop.f32.mrb[2].mxu0 }
 0x2f7   : > { %v718_v59 = vadd.f32 %v717_v58, %v646_v57  ;;  %v1093_v60 = vpop.f32.mrb[3].mxu0 }
 0x2f9   : > { %v1061_v61 = vmul.f32 -1.442695, %v718_v59 }
 0x2fb   : > { %1181 = vpow2.f32 %v1061_v61 }
 0x305   : > { %v1182_v62 = vpop.eup %1181 }
 0x306   : > { %v724_v63 = vadd.f32 1.0, %v1182_v62 }
 0x308   : > { %1183 = vrcp.f32 %v724_v63 }
 0x309   : > { %1185 = vpow2.f32 %v1063_v19 }
 0x312   : > { %v1184_v1 = vpop.eup %1183 }
 0x313   : > { %843 = vperm.xlu0 %1170, %v1184_v1   ;;  %813 = vperm.xlu1 %1163, %v1184_v1   ;;  %v1186_v20 = vpop.eup %1185 }
 0x314   : > { %v808_v21 = vadd.f32 1.0, %v1186_v20 }
 0x316   : > { %1187 = vrcp.f32 %v808_v21 }
 0x317   : > { %1173 = vset.pattern.permute.xlu0 %v1264_v3  ;;  %1165 = vset.pattern.permute.xlu1 %v1265_v4 }
 0x318   : > { %858 = vperm.xlu0 %1173, %v1184_v1   ;;  %818 = vperm.xlu1 %1165, %v1184_v1  }
 0x31c   : > { %1176 = vset.pattern.permute.xlu0 %v1266_v5  ;;  %1166 = vset.pattern.permute.xlu1 %v1267_v6 }
 0x31d   : > { %873 = vperm.xlu0 %1176, %v1184_v1   ;;  %823 = vperm.xlu1 %1166, %v1184_v1  }
 0x320   : > { %v1188_v22 = vpop.eup %1187 }
 0x321   : > { %1179 = vset.pattern.permute.xlu0 %v1268_v7  ;;  %1167 = vset.pattern.permute.xlu1 %v1269_v8 }
 0x322   : > { %888 = vperm.xlu0 %1179, %v1184_v1   ;;  %828 = vperm.xlu1 %1167, %v1184_v1  }
 0x326   : > { %1168 = vset.pattern.permute.xlu1 %v1270_v9 }
 0x327   : > { %833 = vperm.xlu1 %1168, %v1184_v1  }
 0x32b   : > { %1169 = vset.pattern.permute.xlu1 %v1271_v10 }
 0x32c   : > { %838 = vperm.xlu1 %1169, %v1184_v1  }
 0x330   : > { %1171 = vset.pattern.permute.xlu1 %v1272_v11 }
 0x331   : > { %848 = vperm.xlu1 %1171, %v1184_v1  }
 0x335   : > { %1172 = vset.pattern.permute.xlu1 %v1273_v12 }
 0x336   : > { %853 = vperm.xlu1 %1172, %v1184_v1  }
 0x33a   : > { %1174 = vset.pattern.permute.xlu1 %v1274_v13 }
 0x33b   : > { %863 = vperm.xlu1 %1174, %v1184_v1  }
 0x33f   : > { %1175 = vset.pattern.permute.xlu1 %v1275_v14 }
 0x340   : > { %868 = vperm.xlu1 %1175, %v1184_v1  }
 0x344   : > { %1177 = vset.pattern.permute.xlu1 %v1276_v15 }
 0x345   : > { %878 = vperm.xlu1 %1177, %v1184_v1  }
 0x349   : > { %1178 = vset.pattern.permute.xlu1 %v1277_v16 }
 0x34a   : > { %883 = vperm.xlu1 %1178, %v1184_v1  }
 0x392   : > { %v814_v23 = vpop.permute.xlu1 %813  ;;  %v844_v31 = vpop.permute.xlu0 %843 }
 0x393   : > { %v816_v24 = vmul.f32 %v1188_v22, %v814_v23  ;;  %v846_v34 = vmul.f32 %v1188_v22, %v844_v31 }
 0x397   : > { %v819_v25 = vpop.permute.xlu1 %818  ;;  %v859_v36 = vpop.permute.xlu0 %858 }
 0x398   : > { %v821_v26 = vmul.f32 %v1188_v22, %v819_v25  ;;  %v861_v38 = vmul.f32 %v1188_v22, %v859_v36 }
 0x39a   : > { %893 = vrot.lane.b32.xlu1 %v821_v26, %s1259_s12 }
 0x39c   : > { %v824_v27 = vpop.permute.xlu1 %823  ;;  %v874_v45 = vpop.permute.xlu0 %873 }
 0x39d   : > { %v826_v28 = vmul.f32 %v1188_v22, %v824_v27  ;;  %v876_v2 = vmul.f32 %v1188_v22, %v874_v45 }
 0x39f   : > { %897 = vrot.lane.b32.xlu1 %v826_v28, %s1258_s10 }
 0x3a1   : > { %v829_v29 = vpop.permute.xlu1 %828  ;;  %v889_v50 = vpop.permute.xlu0 %888 }
 0x3a2   : > { %v831_v30 = vmul.f32 %v1188_v22, %v829_v29  ;;  %v891_v51 = vmul.f32 %v1188_v22, %v889_v50 }
 0x3a4   : > { %901 = vrot.lane.b32.xlu0 %v831_v30, %s1257_s26 }
 0x3a6   : > { %v834_v32 = vpop.permute.xlu1 %833 }
 0x3a7   : > { %v836_v33 = vmul.f32 %v1188_v22, %v834_v32 }
 0x3a9   : > { %905 = vrot.lane.b32.xlu1 %v836_v33, %s1256_s25 }
 0x3ab   : > { %v839_v35 = vpop.permute.xlu1 %838 }
 0x3ac   : > { %v841_v37 = vmul.f32 %v1188_v22, %v839_v35 }
 0x3ad   : > { %913 = vrot.lane.b32.xlu1 %v846_v34, %s1255_s24 }
 0x3ae   : > { %909 = vrot.lane.b32.xlu0 %v841_v37, %s1543_s20 }
 0x3b0   : > { %v849_v39 = vpop.permute.xlu1 %848 }
 0x3b1   : > { %v851_v40 = vmul.f32 %v1188_v22, %v849_v39  ;;  %921 = vrot.lane.b32.xlu1 %v861_v38, %s1259_s12 }
 0x3b3   : > { %917 = vrot.lane.b32.xlu0 %v851_v40, %s1544_s21 }
 0x3b5   : > { %v854_v41 = vpop.permute.xlu1 %853 }
 0x3b6   : > { %v856_v42 = vmul.f32 %v1188_v22, %v854_v41 }
 0x3ba   : > { %v864_v43 = vpop.permute.xlu1 %863 }
 0x3bb   : > { %v866_v44 = vmul.f32 %v1188_v22, %v864_v43 }
 0x3bd   : > { %925 = vrot.lane.b32.xlu0 %v866_v44, %s1258_s10 }
 0x3bf   : > { %v869_v46 = vpop.permute.xlu1 %868 }
 0x3c0   : > { %v871_v47 = vmul.f32 %v1188_v22, %v869_v46 }
 0x3c1   : > { %933 = vrot.lane.b32.xlu0 %v876_v2, %s1256_s25  ;;  %s296_s25 = sand.u32 1, %s1243_s28  }
 0x3c2   : > { %929 = vrot.lane.b32.xlu1 %v871_v47, %s1257_s26  ;;  %s1070_s26 = sshll.u32 %s1345_s9, 7  ;;  %s976_s23 = scalar_lea.sflag [#allocation3], %s296_s25 }
 0x3c3   : > { %s1484_s22 = scalar_lea.hbm %s1536_s8, %s1070_s26  ;;  %s1278_s9 = smov [#allocation2]  }
 0x3c4   : > { %v879_v48 = vpop.permute.xlu1 %878  ;;  %s1193_s19 = sshll.u32 %s1278_s9, 4  ;;  %s1194_s19 = int_to_ptr.vmem [resolvable:$false] %s1193_s19 }
 0x3c5   : > { %v881_v49 = vmul.f32 %v1188_v22, %v879_v48 }
 0x3c7   : > { %937 = vrot.lane.b32.xlu1 %v881_v49, %s1543_s20  ;;  %s1195_s20 = scalar_lea.vmem %s1194_s19, 256 }
 0x3c9   : > { %v884_v52 = vpop.permute.xlu1 %883 }
 0x3ca   : > { %v886_v53 = vmul.f32 %v1188_v22, %v884_v52 }
 0x3cb   : > { %945 = vrot.lane.b32.xlu1 %v891_v51, %s1544_s21 }
 0x3cc   : > { %941 = vrot.lane.b32.xlu0 %v886_v53, %s1255_s24  ;;  %s1053_s24 = sshll.u32 %s296_s25, 3 }
 0x3cd   : > { %s298_s10 = scalar_lea.vmem [#allocation2], %s1053_s24 }
 0x3ce   : > { %s990_s12 = sshll.u32 %s298_s10, 4  ;;  %s1486_s12 = int_to_ptr.vmem [resolvable:$true] %s990_s12 }
 0x3cf   : > { %s1189_s18 = scalar_lea.vmem %s1486_s12, 128  ;;  %p1196_p0 = scmp.lt.s32.totalorder %s1486_s12, %s1194_s19 }
 0x3d0   : > { %p1190_p11 = scmp.ne.s32.totalorder %s1486_s12, %s1189_s18  ;;  %p1197_p1 = scmp.lt.s32.totalorder %s1195_s20, %s1189_s18 }
 0x3d2   : > { %p1191_p12 = pnand %p1190_p11, %p1362_p5  ;;  %p1198_p2 = por %p1197_p1, %p1196_p0 }
 0x3d4   : > { %p1192_p13 = pneg %p1191_p12 }
 0x3d6   : > { %p1199_p3 = pnand %p1198_p2, %p1192_p13 }
 0x40c   : > { %v894_v54 = vpop.permute.xlu1 %893 }
 0x40d   : > { %v949_v1 = vsel %vm948_vm0, %v816_v24, %v894_v54 }
 0x411   : > { %v898_v55 = vpop.permute.xlu1 %897 }
 0x412   : > { %v951_v4 = vsel %vm950_vm2, %v949_v1, %v898_v55 }
 0x416   : > { %v902_v57 = vpop.permute.xlu0 %901 }
 0x417   : > { %v953_v7 = vsel %vm952_vm3, %v951_v4, %v902_v57 }
 0x41b   : > { %v906_v56 = vpop.permute.xlu1 %905 }
 0x41c   : > { %v955_v10 = vsel %vm954_vm5, %v953_v7, %v906_v56 }
 0x41f   : > { %v914_v58 = vpop.permute.xlu1 %913 }
 0x420   : > { %v910_v59 = vpop.permute.xlu0 %909 }
 0x421   : > { %v957_v11 = vsel %vm956_vm6, %v955_v10, %v910_v59 }
 0x422   : > { %v959_v15 = vsel %vm958_vm7, %v957_v11, %v914_v58 }
 0x423   : > { %v922_v60 = vpop.permute.xlu1 %921 }
 0x424   : > { %v962_v3 = vsel %vm948_vm0, %v856_v42, %v922_v60 }
 0x425   : > { %v918_v61 = vpop.permute.xlu0 %917 }
 0x426   : > { %v961_v18 = vsel %vm960_vm8, %v959_v15, %v918_v61 }
 0x42f   : > { %v926_v62 = vpop.permute.xlu0 %925 }
 0x430   : > { %v963_v5 = vsel %vm950_vm2, %v962_v3, %v926_v62 }
 0x433   : > { %v934_v8 = vpop.permute.xlu0 %933 }
 0x434   : > { %v930_v63 = vpop.permute.xlu1 %929 }
 0x435   : > { %v964_v9 = vsel %vm952_vm3, %v963_v5, %v930_v63 }
 0x436   : > { %v965_v12 = vsel %vm954_vm5, %v964_v9, %v934_v8 }
 0x439   : > { %v938_v6 = vpop.permute.xlu1 %937 }
 0x43a   : > { %v966_v13 = vsel %vm956_vm6, %v965_v12, %v938_v6 }
 0x43d   : > { %v946_v16 = vpop.permute.xlu1 %945 }
 0x43e   : > { %v942_v14 = vpop.permute.xlu0 %941 }
 0x43f   : > { %v967_v17 = vsel %vm958_vm7, %v966_v13, %v942_v14 }
 0x440   : > { %v968_v19 = vsel %vm960_vm8, %v967_v17, %v946_v16 }
 0x441   : > { %v971_v20 = vcombine.low %v961_v18, %v968_v19 }
 0x443   : > { %v973_v21 = vmul.f32 %v971_v20, %v1377_v0 }
 0x445   : > { %974 = vst [vmem:[%s298_s10] sm:$0xff] %v973_v21 }
 0x446   : > { %1202 = shalt.err (!%p1199_p3)
}
 0x447   : > { %s1203_s21 = scalar_lea.hbm %s1484_s22, 128  ;;  %s1207_s26 = scalar_lea.hbm %s1536_s8, 256 }
 0x448   : > { %p1204_p4 = scmp.ne.s32.totalorder %s1484_s22, %s1203_s21  ;;  %p1208_p9 = scmp.lt.u32.totalorder %s1484_s22, %s1536_s8 }
 0x449   : > { %p1209_p10 = scmp.lt.u32.totalorder %s1207_s26, %s1203_s21  ;;  %p1211_p12 = scmp.lt.u32.totalorder %s1203_s21, %s1484_s22 }
 0x44a   : > { %p1205_p7 = pnand %p1204_p4, %p1362_p5 }
 0x44b   : > { %p1210_p11 = por %p1209_p10, %p1208_p9 }
 0x44c   : > { %p1206_p8 = pneg %p1205_p7 }
 0x44d   : > { %p1212_p13 = por %p1211_p12, %p1210_p11 }
 0x44f   : > { %p1213_p0 = pnand %p1212_p13, %p1206_p8 }
 0x451   : > { %1216 = shalt.err (!%p1213_p0)
}
 0x452   : > { %1099 = dma.vmem_to_hbm [thread:$0]  (%p1362_p5), %s1486_s12, 128, %s1484_s22, %s976_s23  }
 0x453 PF: > { %p1105_p1 = scmp.ge.s32.totalorder %s1251_s30, 2  ;;  %s1002_s17 = sand.u32 1, %s1239_s27  }
 0x454   : > { %s1003_s18 = scalar_lea.sflag [#allocation3], %s1002_s17 }
 0x455   : > { %p1102_p2 = pnand %p1105_p1, %p1366_p6 }
 0x457   : > { %1234 = dma.done.wait (!%p1102_p2), %s1003_s18, 128  }
 0x458   : > { %1236 = vsyncadd (!%p1102_p2), %s1003_s18, 4294967168  ;;  %p18_p3 = scmp.ge.s32.totalorder %s1349_s11, 4   ;;  %s1545_s27 = smov %s1243_s28 }
 0x459   : > { %s1546_s28 = smov %s1247_s29  ;;  %s1547_s29 = smov %s1360_s14 }
 0x45a   : > { %s1548_s30 = smov %s1349_s11  ;;  %20 = sbr.rel (!%p18_p3) target bundleno = 3 (0x3), region = 87 }
 0x461   :  { %1008 = vsyncpa [#allocation3], 1 }
 0x462   :  { %1010 = vsyncpa [#allocation3 + $0x1], 1 }

</bundles_post_ra>
